<compile_context>
chip_gen: v6e
topology: v6e:2x2x1
jax: 0.10.0
libtpu: 0.0.40
codegen_flags: <defaults>
</compile_context>

<pallas_src>
import jax
import jax.numpy as jnp
from jax.experimental import pallas as pl
from jax.experimental.pallas import tpu as pltpu


# Cap on the number of concurrent HBM->HBM DMAs; each chunk must carry at
# least ~1 MiB so the fixed DMA-issue cost stays negligible.
_MAX_DMA_CHUNKS = 4
_MIN_CHUNK_BYTES = 1 << 20


def _make_flatten_dma_kernel(bounds):
    """Kernel factory: raw HBM->HBM copy over the given static row chunks."""

    def kernel(x_ref, o_ref, sems):
        copies = []
        # Start every chunk's DMA first (overlap across DMA engines) ...
        for i, (start, size) in enumerate(bounds):
            cp = pltpu.make_async_copy(
                x_ref.at[pl.ds(start, size), :],
                o_ref.at[pl.ds(start, size), :],
                sems.at[i],
            )
            cp.start()
            copies.append(cp)
        # ... then wait on all of them.
        for cp in copies:
            cp.wait()

    return kernel


def flatten_pallas(x: jax.Array, nb_flat_features: int,
                   *, materialize: bool = False) -> jax.Array:
    """Equivalent of torch `x.view(-1, nb_flat_features)`.

    materialize=False (default): zero-cost metadata reshape (what .view does).
    materialize=True: produce a physically new buffer via raw HBM->HBM DMA.
    """
    total = x.size
    assert total % nb_flat_features == 0, (
        f"cannot view {x.shape} as (-1, {nb_flat_features})")
    rows_out = total // nb_flat_features

    if not materialize or total == 0:
        # Pure-metadata flatten: XLA lowers this to a bitcast / no-op.
        return x.reshape(rows_out, nb_flat_features)

    # Zero-cost row-major view to the target 2-D shape; the kernel then only
    # has to copy between identically-shaped HBM buffers.
    x2d = x.reshape(rows_out, nb_flat_features)

    # Decide how many row chunks to DMA: each chunk >= ~1 MiB, at most
    # _MAX_DMA_CHUNKS, at most one chunk per row.
    row_bytes = nb_flat_features * x.dtype.itemsize
    total_bytes = rows_out * row_bytes
    n_chunks = int(min(_MAX_DMA_CHUNKS, rows_out,
                       max(1, total_bytes // _MIN_CHUNK_BYTES)))
    chunk_rows = pl.cdiv(rows_out, n_chunks)
    n_chunks = pl.cdiv(rows_out, chunk_rows)  # drop empty trailing chunks
    bounds = [
        (i * chunk_rows, min(chunk_rows, rows_out - i * chunk_rows))
        for i in range(n_chunks)
    ]

    return pl.pallas_call(
        _make_flatten_dma_kernel(bounds),
        out_shape=jax.ShapeDtypeStruct((rows_out, nb_flat_features), x.dtype),
        in_specs=[pl.BlockSpec(memory_space=pl.ANY)],   # raw HBM ref, no auto-DMA
        out_specs=pl.BlockSpec(memory_space=pl.ANY),    # raw HBM ref
        scratch_shapes=[pltpu.SemaphoreType.DMA((n_chunks,))],
    )(x2d)


if __name__ == "__main__":
    key = jax.random.PRNGKey(0)
    k1, k2, k3 = jax.random.split(key, 3)

    # 1) Small NCHW input consistent with a conv feature map; exercise the
    #    Pallas HBM->HBM DMA path explicitly.
    N, C, H, W = 2, 4, 16, 16
    nb1 = C * H * W
    x1 = jax.random.normal(k1, (N, C, H, W), dtype=jnp.float32)
    y1 = jax.block_until_ready(flatten_pallas(x1, nb1, materialize=True))
    assert y1.shape == (N, nb1) and y1.dtype == x1.dtype
    assert bool(jnp.array_equal(y1, x1.reshape(-1, nb1)))

    # Default (recommended) path: zero-cost metadata reshape.
    y1v = jax.block_until_ready(flatten_pallas(x1, nb1))
    assert y1v.shape == (N, nb1)
    assert bool(jnp.array_equal(y1v, x1.reshape(-1, nb1)))

    # 2) Larger case through the DMA path.
    x2 = jax.random.normal(k2, (8, 16, 32, 32), dtype=jnp.float32)
    nb2 = 16 * 32 * 32
    y2 = jax.block_until_ready(flatten_pallas(x2, nb2, materialize=True))
    assert y2.shape == (8, nb2)
    assert bool(jnp.array_equal(y2, x2.reshape(-1, nb2)))

    # 3) Ragged total (not a multiple of 128): the raw-DMA path copies
    #    arbitrary element counts — no pad-and-slice needed.
    x3 = jax.random.normal(k3, (3, 5, 7, 9), dtype=jnp.float32)
    nb3 = 5 * 7 * 9
    y3 = jax.block_until_ready(flatten_pallas(x3, nb3, materialize=True))
    assert y3.shape == (3, nb3)
    assert bool(jnp.array_equal(y3, x3.reshape(-1, nb3)))

    print("KERNEL_OK")
</pallas_src>

<mosaic_0001>
module attributes {stable_mosaic.version = 11 : i64} {
  func.func @kernel(%arg0: memref<2x1024xf32, #tpu.memory_space<any>>, %arg1: memref<2x1024xf32, #tpu.memory_space<any>>, %arg2: memref<1x!tpu.dma_semaphore, #tpu.memory_space<semaphore_mem>>) attributes {dimension_semantics = [], scalar_prefetch = 0 : i64, scratch_operands = 1 : i64, tpu.core_type = #tpu.core_type<tc>} {
    %c0_i32 = arith.constant 0 : i32
    %c0_i32_0 = arith.constant 0 : i32
    %c0_i32_1 = arith.constant 0 : i32
    %0 = tpu.memref_slice %arg0[%c0_i32_0, %c0_i32_1] : memref<2x1024xf32, #tpu.memory_space<any>> -> memref<2x1024xf32, #tpu.memory_space<any>>
    %c0_i32_2 = arith.constant 0 : i32
    %c0_i32_3 = arith.constant 0 : i32
    %1 = tpu.memref_slice %arg1[%c0_i32_2, %c0_i32_3] : memref<2x1024xf32, #tpu.memory_space<any>> -> memref<2x1024xf32, #tpu.memory_space<any>>
    %2 = tpu.memref_slice %arg2[%c0_i32] : memref<1x!tpu.dma_semaphore, #tpu.memory_space<semaphore_mem>> -> memref<1x!tpu.dma_semaphore, #tpu.memory_space<semaphore_mem>>
    %3 = tpu.memref_squeeze %2 : memref<1x!tpu.dma_semaphore, #tpu.memory_space<semaphore_mem>> -> memref<!tpu.dma_semaphore, #tpu.memory_space<semaphore_mem>>
    tpu.enqueue_dma source(%0 : memref<2x1024xf32, #tpu.memory_space<any>>) target(%1 : memref<2x1024xf32, #tpu.memory_space<any>>) target_semaphore(%3 : memref<!tpu.dma_semaphore, #tpu.memory_space<semaphore_mem>>)
    %c0_i32_4 = arith.constant 0 : i32
    %c0_i32_5 = arith.constant 0 : i32
    %c0_i32_6 = arith.constant 0 : i32
    %4 = tpu.memref_slice %arg0[%c0_i32_5, %c0_i32_6] : memref<2x1024xf32, #tpu.memory_space<any>> -> memref<2x1024xf32, #tpu.memory_space<any>>
    %c0_i32_7 = arith.constant 0 : i32
    %c0_i32_8 = arith.constant 0 : i32
    %5 = tpu.memref_slice %arg1[%c0_i32_7, %c0_i32_8] : memref<2x1024xf32, #tpu.memory_space<any>> -> memref<2x1024xf32, #tpu.memory_space<any>>
    %6 = tpu.memref_slice %arg2[%c0_i32_4] : memref<1x!tpu.dma_semaphore, #tpu.memory_space<semaphore_mem>> -> memref<1x!tpu.dma_semaphore, #tpu.memory_space<semaphore_mem>>
    %7 = tpu.memref_squeeze %6 : memref<1x!tpu.dma_semaphore, #tpu.memory_space<semaphore_mem>> -> memref<!tpu.dma_semaphore, #tpu.memory_space<semaphore_mem>>
    tpu.wait_dma2 semaphore(%7 : memref<!tpu.dma_semaphore, #tpu.memory_space<semaphore_mem>>) src(%4 : memref<2x1024xf32, #tpu.memory_space<any>>) dst(%5 : memref<2x1024xf32, #tpu.memory_space<any>>)
    return
  }
}

</mosaic_0001>

<bundles_post_ra>
// kernel: tpu_custom_call.1
= control target key start
LH: loop header
LB: loop body
LE: loop exit
PB: predicated region body
PF: predicated region fallthrough
CT: control target
= control target key end

     0   :  { %s29_s6 = smov [#allocation2]   ;;  %s30_s7 = smov 131072   ;;  %s48_s0 = inlined_call_operand.hbm [shape: f32[2,1024], index: 0, kind: input, shape index: {}]   ;;  %s49_s1 = inlined_call_operand.hbm [shape: f32[2,1024], index: 1, kind: output, shape index: {}]  }
   0x1   :  { %s31_s8 = smov 0  }
   0x2   :  { %12 = dma.general %s48_s0, 256, %s49_s1, %s29_s6, %s30_s7, [#allocation4], %s31_s8, 0  }
   0x3   :  { %27 = dma.done.wait [#allocation2], 256 }
   0x4   :  { %28 = vsyncadd [#allocation2], 4294967040 }
   0x5   :  { %17 = vsyncmov [#allocation2] }
   0x8   :  { %s18_s13 = vpop.sfrf %17 }
   0x9   :  { %p23_p0 = scmp.ne.s32.totalorder %s18_s13, 0 }
   0xb   :  { %22 = shalt.err (%p23_p0)  }

</bundles_post_ra>
